<compile_context>
chip_gen: v7x
topology: tpu7x:2x2x1
jax: 0.10.0
libtpu: 0.0.40
codegen_flags: <defaults>
</compile_context>

<pallas_src>
import math
import functools

import jax
import jax.numpy as jnp
from jax.experimental import pallas as pl
from jax.experimental.pallas import tpu as pltpu


_VMEM_TILE_BUDGET = 16 * 1024 * 1024   # budget for double-buffered activation tiles
_VMEM_LIMIT = 32 * 1024 * 1024         # explicit scoped-VMEM request (safe on v5e/v6e/v7x)


def _lbkt_layer_kernel(factor_ref, h_ref, ie_ref, w_ref, bias_ref, o_ref,
                       *, d, k, b, dim_h, mxu_dtype):
    """Fused gate + (concat-matmul as two dots on static weight views)
    + bias + sigmoid(w * gate) for one batch tile."""
    # gate = k + (1 - k) * sigmoid(d * (factor - b)); (tb, 1) broadcasts to (tb, H).
    factor = factor_ref[...].astype(jnp.float32)
    gate = k + (1.0 - k) * jax.nn.sigmoid(d * (factor - b))

    # cat([h, interact_emb], -1) @ W  ==  h @ W[:H] + interact_emb @ W[H:]
    # W[:H] / W[H:] are static, sublane-aligned views of the resident weight Ref.
    lhs_h = h_ref[...].astype(mxu_dtype)
    lhs_ie = ie_ref[...].astype(mxu_dtype)
    w = jnp.dot(lhs_h, w_ref[:dim_h, :], preferred_element_type=jnp.float32)
    w += jnp.dot(lhs_ie, w_ref[dim_h:, :], preferred_element_type=jnp.float32)
    w += bias_ref[...].astype(jnp.float32)      # (1, H) broadcast over batch rows

    o_ref[...] = jax.nn.sigmoid(w * gate).astype(o_ref.dtype)


def _choose_batch_tile(B, H, in_itemsize, out_itemsize):
    """Batch tile from a VMEM budget (double-buffered factor/h/ie inputs +
    output), capped at 1024 rows and capped so big batches get >= 2 grid steps
    (megacore on v7x)."""
    if B <= 8:
        return B                              # single full block (block == array dims)
    bytes_per_row = 2 * ((1 + 2 * H) * in_itemsize + H * out_itemsize)
    tb = _VMEM_TILE_BUDGET // max(bytes_per_row, 1)
    tb = min(int(tb), 1024)                   # per-step overhead ~0.35us; 512-1024 near roofline
    half = -(-B // 2)                         # cdiv(B, 2)
    half = -(-half // 8) * 8                  # round up to the f32 sublane multiple
    tb = min(tb, half)                        # ensure >= 2 grid steps when batch allows
    return max(8, (tb // 8) * 8)


def lbkt_layer_forward(factor, interact_emb, h, weight, bias,
                       *, d, k, b, mxu_bf16=True, block_b=None):
    """Pallas wrapper.

    factor:       (B, 1)   f32/bf16
    interact_emb: (B, H)   f32/bf16
    h:            (B, H)   f32/bf16
    weight:       (2H, H)  f32/bf16   (PyTorch: self.weight)
    bias:         (1, H)   f32
    returns:      (B, H)   dtype of h
    """
    B, H = h.shape
    assert weight.shape == (2 * H, H)
    assert bias.shape == (1, H)
    assert factor.shape == (B, 1)
    assert interact_emb.shape == (B, H)

    mxu_dtype = jnp.bfloat16 if mxu_bf16 else jnp.float32
    if mxu_bf16 and weight.dtype != jnp.bfloat16:
        # One-time (2H, H) cast: halves the weight HBM stream and avoids a
        # per-grid-step in-kernel cast of the resident parameter.
        weight = weight.astype(jnp.bfloat16)

    # Sublane alignment so w_ref[:H] / w_ref[H:] are zero-cost aligned Ref views.
    w_sublane = 16 if weight.dtype == jnp.bfloat16 else 8
    assert H % w_sublane == 0, f"dim_h must be a multiple of {w_sublane}"

    out_dtype = h.dtype
    tb = block_b if block_b is not None else _choose_batch_tile(
        B, H, jnp.dtype(h.dtype).itemsize, jnp.dtype(out_dtype).itemsize)

    grid = (pl.cdiv(B, tb),)   # no padding: the final partial block is clipped

    kernel = functools.partial(_lbkt_layer_kernel,
                               d=float(d), k=float(k), b=float(b),
                               dim_h=H, mxu_dtype=mxu_dtype)

    return pl.pallas_call(
        kernel,
        out_shape=jax.ShapeDtypeStruct((B, H), out_dtype),
        grid=grid,
        in_specs=[
            pl.BlockSpec((tb, 1), lambda i: (i, 0)),        # factor tile
            pl.BlockSpec((tb, H), lambda i: (i, 0)),        # h tile
            pl.BlockSpec((tb, H), lambda i: (i, 0)),        # interact_emb tile
            pl.BlockSpec((2 * H, H), lambda i: (0, 0)),     # weight (resident, fetched once)
            pl.BlockSpec((1, H), lambda i: (0, 0)),         # bias   (resident, fetched once)
        ],
        out_specs=pl.BlockSpec((tb, H), lambda i: (i, 0)),
        compiler_params=pltpu.CompilerParams(
            dimension_semantics=("parallel",),
            vmem_limit_bytes=_VMEM_LIMIT),
    )(factor, h, interact_emb, weight, bias)


def _xavier_normal(key, shape):
    # matches torch.nn.init.xavier_normal_: std = sqrt(2 / (fan_in + fan_out))
    fan_out, fan_in = shape[0], shape[1]
    std = math.sqrt(2.0 / (fan_in + fan_out))
    return std * jax.random.normal(key, shape, dtype=jnp.float32)


if __name__ == "__main__":
    # Small shapes consistent with the module: batch=8, dim_h=32.
    B, H = 8, 32
    d, k, b = 1.0, 0.3, 0.5

    root = jax.random.PRNGKey(0)
    k_w, k_b, k_f, k_ie, k_h = jax.random.split(root, 5)

    weight = _xavier_normal(k_w, (2 * H, H))          # nn.Parameter(Tensor(2H, H))
    bias = _xavier_normal(k_b, (1, H))                # xavier_normal_ on (1, H)

    factor = jax.random.uniform(k_f, (B, 1), dtype=jnp.float32)
    interact_emb = jax.random.normal(k_ie, (B, H), dtype=jnp.float32)
    h = jax.random.normal(k_h, (B, H), dtype=jnp.float32)

    out = lbkt_layer_forward(factor, interact_emb, h, weight, bias,
                             d=d, k=k, b=b)
    out = jax.block_until_ready(out)

    # Pure-JAX f32 reference (mirrors the PyTorch forward exactly).
    gate_ref = k + (1.0 - k) / (1.0 + jnp.exp(-d * (factor - b)))
    w_ref = jnp.concatenate([h, interact_emb], axis=-1) @ weight + bias
    ref = jax.nn.sigmoid(w_ref * gate_ref)
    # bf16 MXU operands loosen agreement slightly; sigmoid compresses the error.
    assert jnp.allclose(out, ref, atol=1e-2, rtol=1e-2), "mismatch vs reference"

    print("KERNEL_OK")
</pallas_src>

<mosaic_0001>
module attributes {stable_mosaic.version = 11 : i64} {
  func.func @_lbkt_layer_kernel(%arg0: i32, %arg1: memref<8x1xf32, #tpu.memory_space<vmem>>, %arg2: memref<8x32xf32, #tpu.memory_space<vmem>>, %arg3: memref<8x32xf32, #tpu.memory_space<vmem>>, %arg4: memref<64x32xbf16, #tpu.memory_space<vmem>>, %arg5: memref<1x32xf32, #tpu.memory_space<vmem>>, %arg6: memref<8x32xf32, #tpu.memory_space<vmem>>) attributes {dimension_semantics = [#tpu.dimension_semantics<parallel>], iteration_bounds = array<i64: 1>, scalar_prefetch = 0 : i64, scratch_operands = 0 : i64, tpu.core_type = #tpu.core_type<tc>, window_params = [{transform_indices = @transform_0, window_bounds = array<i64: 8, 1>}, {transform_indices = @transform_1, window_bounds = array<i64: 8, 32>}, {transform_indices = @transform_2, window_bounds = array<i64: 8, 32>}, {pipeline_mode = #tpu.pipeline_mode<synchronous>, transform_indices = @transform_3, window_bounds = array<i64: 64, 32>}, {pipeline_mode = #tpu.pipeline_mode<synchronous>, transform_indices = @transform_4, window_bounds = array<i64: 1, 32>}, {transform_indices = @transform_5, window_bounds = array<i64: 8, 32>}]} {
    %c0 = arith.constant 0 : index
    %c0_0 = arith.constant 0 : index
    %0 = vector.load %arg1[%c0, %c0_0] : memref<8x1xf32, #tpu.memory_space<vmem>>, vector<8x1xf32>
    %cst = arith.constant 5.000000e-01 : f32
    %1 = vector.broadcast %cst : f32 to vector<8x1xf32>
    %2 = arith.subf %0, %1 : vector<8x1xf32>
    %cst_1 = arith.constant 1.000000e+00 : f32
    %3 = vector.broadcast %cst_1 : f32 to vector<8x1xf32>
    %4 = arith.mulf %3, %2 : vector<8x1xf32>
    %5 = arith.negf %4 : vector<8x1xf32>
    %6 = math.exp %5 : vector<8x1xf32>
    %cst_2 = arith.constant 1.000000e+00 : f32
    %7 = vector.broadcast %cst_2 : f32 to vector<8x1xf32>
    %8 = arith.addf %7, %6 : vector<8x1xf32>
    %9 = arith.divf %7, %8 : vector<8x1xf32>
    %cst_3 = arith.constant 0.699999988 : f32
    %10 = vector.broadcast %cst_3 : f32 to vector<8x1xf32>
    %11 = arith.mulf %10, %9 : vector<8x1xf32>
    %cst_4 = arith.constant 3.000000e-01 : f32
    %12 = vector.broadcast %cst_4 : f32 to vector<8x1xf32>
    %13 = arith.addf %12, %11 : vector<8x1xf32>
    %c0_5 = arith.constant 0 : index
    %c0_6 = arith.constant 0 : index
    %14 = vector.load %arg2[%c0_5, %c0_6] : memref<8x32xf32, #tpu.memory_space<vmem>>, vector<8x32xf32>
    %15 = arith.truncf %14 : vector<8x32xf32> to vector<8x32xbf16>
    %c0_7 = arith.constant 0 : index
    %c0_8 = arith.constant 0 : index
    %16 = vector.load %arg3[%c0_7, %c0_8] : memref<8x32xf32, #tpu.memory_space<vmem>>, vector<8x32xf32>
    %17 = arith.truncf %16 : vector<8x32xf32> to vector<8x32xbf16>
    %c0_9 = arith.constant 0 : index
    %c0_10 = arith.constant 0 : index
    %18 = vector.load %arg4[%c0_9, %c0_10] : memref<64x32xbf16, #tpu.memory_space<vmem>>, vector<32x32xbf16>
    %cst_11 = arith.constant dense<0.000000e+00> : vector<8x32xf32>
    %19 = tpu.matmul %15, %18, %cst_11 {dimension_numbers = #tpu.dot_dimension_numbers<[1], [0], [0], [1], [0, 0, 1, 1], [], []>} : vector<8x32xbf16>, vector<32x32xbf16>, vector<8x32xf32> -> vector<8x32xf32>
    %c32 = arith.constant 32 : index
    %c0_12 = arith.constant 0 : index
    %20 = vector.load %arg4[%c32, %c0_12] : memref<64x32xbf16, #tpu.memory_space<vmem>>, vector<32x32xbf16>
    %cst_13 = arith.constant dense<0.000000e+00> : vector<8x32xf32>
    %21 = tpu.matmul %17, %20, %cst_13 {dimension_numbers = #tpu.dot_dimension_numbers<[1], [0], [0], [1], [0, 0, 1, 1], [], []>} : vector<8x32xbf16>, vector<32x32xbf16>, vector<8x32xf32> -> vector<8x32xf32>
    %22 = arith.addf %19, %21 : vector<8x32xf32>
    %c0_14 = arith.constant 0 : index
    %c0_15 = arith.constant 0 : index
    %23 = vector.load %arg5[%c0_14, %c0_15] : memref<1x32xf32, #tpu.memory_space<vmem>>, vector<1x32xf32>
    %24 = vector.broadcast %23 : vector<1x32xf32> to vector<8x32xf32>
    %25 = arith.addf %22, %24 : vector<8x32xf32>
    %26 = vector.broadcast %13 : vector<8x1xf32> to vector<8x32xf32>
    %27 = arith.mulf %25, %26 : vector<8x32xf32>
    %28 = arith.negf %27 : vector<8x32xf32>
    %29 = math.exp %28 : vector<8x32xf32>
    %cst_16 = arith.constant 1.000000e+00 : f32
    %30 = vector.broadcast %cst_16 : f32 to vector<8x32xf32>
    %31 = arith.addf %30, %29 : vector<8x32xf32>
    %32 = arith.divf %30, %31 : vector<8x32xf32>
    %c0_17 = arith.constant 0 : index
    %c0_18 = arith.constant 0 : index
    %33 = vector.load %arg6[%c0_17, %c0_18] : memref<8x32xf32, #tpu.memory_space<vmem>>, vector<8x32xf32>
    tpu.vector_store %arg6[%c0_17, %c0_18], %32 {strides = array<i32>} : memref<8x32xf32, #tpu.memory_space<vmem>>, vector<8x32xf32>,
    return
  }
  func.func @transform_0(%arg0: i32) -> (i32, i32) {
    %c0_i32 = arith.constant 0 : i32
    %c0_i32_0 = arith.constant 0 : i32
    return %arg0, %c0_i32 : i32, i32
  }
  func.func @transform_1(%arg0: i32) -> (i32, i32) {
    %c0_i32 = arith.constant 0 : i32
    %c0_i32_0 = arith.constant 0 : i32
    return %arg0, %c0_i32 : i32, i32
  }
  func.func @transform_2(%arg0: i32) -> (i32, i32) {
    %c0_i32 = arith.constant 0 : i32
    %c0_i32_0 = arith.constant 0 : i32
    return %arg0, %c0_i32 : i32, i32
  }
  func.func @transform_3(%arg0: i32) -> (i32, i32) {
    %c0_i32 = arith.constant 0 : i32
    %c0_i32_0 = arith.constant 0 : i32
    %c0_i32_1 = arith.constant 0 : i32
    return %c0_i32, %c0_i32_0 : i32, i32
  }
  func.func @transform_4(%arg0: i32) -> (i32, i32) {
    %c0_i32 = arith.constant 0 : i32
    %c0_i32_0 = arith.constant 0 : i32
    %c0_i32_1 = arith.constant 0 : i32
    return %c0_i32, %c0_i32_0 : i32, i32
  }
  func.func @transform_5(%arg0: i32) -> (i32, i32) {
    %c0_i32 = arith.constant 0 : i32
    %c0_i32_0 = arith.constant 0 : i32
    return %arg0, %c0_i32 : i32, i32
  }
}

</mosaic_0001>

<bundles_post_ra>
// kernel: tpu_custom_call.1
= control target key start
LH: loop header
LB: loop body
LE: loop exit
PB: predicated region body
PF: predicated region fallthrough
CT: control target
= control target key end

     0   :  { %v263_v1 = vmov 0.0   ;;  %vm264_vm0 = vmmov 0   ;;  %v265_v9 = vmov 0   ;;  %s336_s0 = inlined_call_operand.vmem [shape: f32[8,1], index: 0, kind: input, shape index: {}]   ;;  %s337_s1 = inlined_call_operand.vmem [shape: f32[8,32], index: 1, kind: input, shape index: {}]   ;;  %s338_s2 = inlined_call_operand.vmem [shape: f32[8,32], index: 2, kind: input, shape index: {}]   ;;  %s339_s3 = inlined_call_operand.vmem [shape: bf16[64,32], index: 3, kind: input, shape index: {}]   ;;  %s340_s4 = inlined_call_operand.vmem [shape: f32[1,32], index: 4, kind: input, shape index: {}]   ;;  %s341_s5 = inlined_call_operand.hbm [shape: f32[8,32], index: 5, kind: output, shape index: {}]  }
   0x1   :  { %v227_v0 = vld [vmem:[%s339_s3 + $0x10] sm:$0xff]   ;;  %206 = vmatprep.subr.bf16.mxu0 %v263_v1  ;;  %214 = vmatprep.subr.bf16.mxu1 %v263_v1  ;;  %v228_v2 = vld [vmem:[%s339_s3] sm:$0xff]   ;;  %v229_v3 = vld [vmem:[%s339_s3 + $0x18] sm:$0xff]  }
   0x2   :  { %207 = vmatpush3.bf16.msra.mxu0 %v227_v0  ;;  %210 = vmatprep.mubr.msk.bf16.mxu0 %vm264_vm0, %v263_v1  ;;  %v230_v4 = vld [vmem:[%s339_s3 + $0x8] sm:$0xff]   ;;  %v34_v5 = vld [vmem:[%s338_s2] sm:$0xff] }
   0x3   :  { %215 = vmatpush3.bf16.msra.mxu1 %v228_v2  ;;  %208 = vmatprep.subr.bf16.mxu0 %v263_v1  ;;  %v32_v6 = vld [vmem:[%s337_s1] sm:$0xff]  ;;  %v35_v8 = vpack.c.bf16 %v34_v5, %v34_v5 }
   0x4   :  { %216 = vmatprep.subr.bf16.mxu1 %v263_v1  ;;  %218 = vmatprep.mubr.msk.bf16.mxu1 %vm264_vm0, %v263_v1  ;;  %v22_v7 = vld [vmem:[%s336_s0] sm:$0xff] }
   0x5   :  { %226 = vset.pattern.permute.xlu0 %v265_v9  ;;  %v190_v10 = vadd.f32 -0.5, %v22_v7 }
   0x6   :  { %10 = vsyncpa [#allocation3], 0  ;;  %209 = vmatpush3.bf16.msra.mxu0 %v229_v3  ;;  %vm56_vm1 = vcmask 261120   ;;  %v33_v11 = vpack.c.bf16 %v32_v6, %v32_v6  ;;  %v198_v22 = vld [vmem:[%s340_s4] ss:$0 sm:$0xff]  ;;  %s266_s2 = smov [#allocation2]  }
   0x7   :  { %217 = vmatpush3.bf16.msra.mxu1 %v230_v4  ;;  %v191_v12 = vmul.f32 -1.442695, %v190_v10  ;;  %s182_s3 = sshll.u32 %s266_s2, 4  ;;  %s183_s3 = int_to_ptr.vmem [resolvable:$true] %s182_s3 }
   0x8   :  { %s239_s4 = scalar_lea.vmem %s183_s3, 128  ;;  %p244_p1 = scmp.lt.s32.totalorder %s183_s3, %s183_s3 }
   0x9   :  { %211 = vmatmul.mubr.msk.bf16.vlgmr.msra.gmra.mrb[0].mxu0 %vm56_vm1, %v35_v8  ;;  %231 = vpow2.f32 %v191_v12  ;;  %p240_p0 = scmp.ne.s32.totalorder %s183_s3, %s239_s4  ;;  %p245_p2 = scmp.lt.s32.totalorder %s239_s4, %s239_s4 }
   0xa   :  { %219 = vmatmul.mubr.msk.bf16.vlgmr.msra.gmra.mrb[0].mxu1 %vm56_vm1, %v33_v11 }
   0xb   :  { %p246_p3 = por %p245_p2, %p244_p1 }
   0xd   :  { %p247_p4 = pnand %p246_p3, %p240_p0 }
  0x13   :  { %v232_v13 = vpop.eup %231 }
  0x14   :  { %v27_v14 = vadd.f32 1.0, %v232_v13 }
  0x16   :  { %233 = vrcp.f32 %v27_v14 }
  0x20   :  { %v234_v15 = vpop.eup %233 }
  0x21   :  { %v30_v16 = vmul.f32 0.7, %v234_v15 }
  0x23   :  { %v31_v17 = vadd.f32 0.3, %v30_v16 }
  0x25   :  { %165 = vperm.xlu0 %226, %v31_v17  }
  0xa4   :  { %v166_v19 = vpop.permute.xlu0 %165 }
  0xdc   :  { %v94_v18 = vpop.f32.mrb[0].mxu0 }
  0xdd   :  { %v149_v20 = vpop.f32.mrb[0].mxu1  ;;  %v212_v21 = vpop.f32.mrb[1].mxu0 }
  0xde   :  { %v150_v23 = vadd.f32 %v149_v20, %v94_v18  ;;  %v220_v24 = vpop.f32.mrb[1].mxu1  ;;  %v97_v25 = vpop.f32.mrb[2].mxu0 }
  0xdf   :  { %v152_v26 = vpop.f32.mrb[2].mxu1  ;;  %v213_v27 = vpop.f32.mrb[3].mxu0 }
  0xe0   :  { %v221_v28 = vpop.f32.mrb[3].mxu1  ;;  %v162_v29 = vadd.f32 %v198_v22, %v150_v23 }
  0xe2   :  { %v168_v30 = vmul.f32 %v166_v19, %v162_v29 }
  0xe4   :  { %v199_v31 = vmul.f32 -1.442695, %v168_v30 }
  0xe6   :  { %235 = vpow2.f32 %v199_v31 }
  0xf0   :  { %v236_v32 = vpop.eup %235 }
  0xf1   :  { %v172_v33 = vadd.f32 1.0, %v236_v32 }
  0xf3   :  { %237 = vrcp.f32 %v172_v33 }
  0xfd   :  { %v238_v34 = vpop.eup %237 }
  0xfe   :  { %175 = vst.msk [vmem:[#allocation2] sm:$0xff] %vm56_vm1, %v238_v34 }
  0xff   :  { %250 = shalt.err (!%p247_p4)
}
 0x100   :  { %s251_s9 = scalar_lea.hbm %s341_s5, 128 }
 0x101   :  { %p252_p5 = scmp.ne.s32.totalorder %s341_s5, %s251_s9  ;;  %p255_p6 = scmp.lt.u32.totalorder %s251_s9, %s341_s5 }
 0x103   :  { %p257_p7 = pnand %p255_p6, %p252_p5 }
 0x105   :  { %260 = shalt.err (!%p257_p7)
}
 0x106   :  { %185 = dma.vmem_to_hbm [thread:$0]  %s183_s3, 128, %s341_s5, [#allocation3]  }
 0x107   :  { %261 = dma.done.wait [#allocation3], 128  }
 0x108   :  { %262 = vsyncadd [#allocation3], 4294967168 }
 0x109   :  { %189 = vsyncpa [#allocation3], 1 }

</bundles_post_ra>
